<compile_context>
chip_gen: v5e
topology: v5e:2x2
jax: 0.10.0
libtpu: 0.0.40
codegen_flags: <defaults>
</compile_context>

<pallas_src>
import functools

import jax
import jax.numpy as jnp
from jax import lax
from jax.experimental import pallas as pl
from jax.experimental.pallas import tpu as pltpu


def _cnn_encoder_kernel(L, x_ref, w1_ref, b1_ref, w2_ref, b2_ref, wl_ref, bl_ref,
                        out_ref):
    T, _ = x_ref.shape                    # T = (batches per tile) * L, batch folded into rows
    BPT = T // L
    H = b1_ref.shape[-1]

    # ---- conv boundary masks, built in-kernel (no HBM inputs).
    # pos = position of each row inside its length-L sequence; a tap that would
    # read across a sequence (= batch) boundary is the conv's zero padding.
    pos = lax.broadcasted_iota(jnp.int32, (T, 1), 0) % L
    mprev = (pos != 0).astype(jnp.float32)          # (T, 1): x[l-1] tap valid
    mnext = (pos != (L - 1)).astype(jnp.float32)    # (T, 1): x[l+1] tap valid

    # ---- Conv1d(Cin -> H, k=3, pad=1): im2col -> one small-K bf16 MXU matmul.
    x = x_ref[...]                                   # (T, Cin) f32
    x_prev = (pltpu.roll(x, shift=1, axis=0) * mprev).astype(jnp.bfloat16)
    x_next = (pltpu.roll(x, shift=T - 1, axis=0) * mnext).astype(jnp.bfloat16)
    p1 = jnp.concatenate([x_prev, x.astype(jnp.bfloat16), x_next], axis=1)  # (T, 3*Cin) bf16
    y1 = jnp.dot(p1, w1_ref[...], preferred_element_type=jnp.float32) + b1_ref[...]
    y1 = jnp.maximum(y1, 0.0)                        # (T, H) f32

    # ---- Conv1d(H -> H, k=3, pad=1): im2col -> single wide-K bf16 MXU matmul.
    # roll+mask in f32 (v5e has no bf16 VALU), cast to bf16 before the concat so
    # `patches` (the largest live intermediate) is half-width.
    y1_prev = (pltpu.roll(y1, shift=1, axis=0) * mprev).astype(jnp.bfloat16)
    y1_next = (pltpu.roll(y1, shift=T - 1, axis=0) * mnext).astype(jnp.bfloat16)
    patches = jnp.concatenate([y1_prev, y1.astype(jnp.bfloat16), y1_next], axis=1)  # (T, 3H) bf16
    y2 = jnp.dot(patches, w2_ref[...], preferred_element_type=jnp.float32) + b2_ref[...]
    y2 = jnp.maximum(y2, 0.0)                        # (T, H) f32

    # ---- AdaptiveAvgPool1d(1).squeeze(-1): per-sequence mean over L.
    pooled = jnp.mean(y2.reshape(BPT, L, H), axis=1)                 # (BPT, H) f32

    # ---- Linear(H -> O).
    out_ref[...] = (jnp.dot(pooled.astype(jnp.bfloat16), wl_ref[...],
                            preferred_element_type=jnp.float32)
                    + bl_ref[...])                                   # (BPT, O) f32


def _pick_batches_per_tile(B, L, target_rows=512):
    """Tile the folded (B*L) row axis in whole sequences so the conv boundary
    masks stay within-tile (no halo DMA). Output blocks must be either the full
    batch or a multiple of 8 rows (block-shape constraint); prefer >=512 rows
    per tile so the x-stream pipelines, and multiple tiles feed v7x's 2nd core."""
    for d in range(1, B):
        if B % d == 0 and d % 8 == 0 and d * L >= target_rows:
            return d
    return B


def cnn_encoder(x, params):
    """x: (B, L, C_in) float32 (the PyTorch forward's pre-permute layout).
    Returns (B, output_dim) float32."""
    # TODO(synk): the PyTorch `x.dim() == 1 -> view(1, 3, -1)` rank dispatch and
    # the debug print are host-side glue, not kernel work.
    w1, b1, w2, b2, wl, bl = params
    B, L, Cin = x.shape
    H = w1.shape[-1]
    O = wl.shape[-1]

    BPT = _pick_batches_per_tile(B, L)      # batches (whole sequences) per grid step
    num_tiles = B // BPT
    # Note: keep BPT*L a multiple of 8 (pad L host-side if shapes become dynamic);
    # the axis-0 roll over a sublane-padded block may hit a slow lowering otherwise.

    # Host-side layout prep: fold batch into the matmul M dimension, flatten conv
    # taps for im2col, cast weight matrices feeding the MXU to bf16 (accumulation
    # stays f32 in-kernel; biases stay f32).
    x2d = x.reshape(B * L, Cin).astype(jnp.float32)
    w1f = w1.reshape(3 * Cin, H).astype(jnp.bfloat16)     # im2col rows: k*Cin + c
    w2f = w2.reshape(3 * H, H).astype(jnp.bfloat16)       # im2col rows: k*H + c
    wlf = wl.astype(jnp.bfloat16)
    b1f = b1.reshape(1, H).astype(jnp.float32)
    b2f = b2.reshape(1, H).astype(jnp.float32)
    blf = bl.reshape(1, O).astype(jnp.float32)

    kernel = functools.partial(_cnn_encoder_kernel, L)
    return pl.pallas_call(
        kernel,
        out_shape=jax.ShapeDtypeStruct((B, O), jnp.float32),
        grid_spec=pltpu.PrefetchScalarGridSpec(
            num_scalar_prefetch=0,
            grid=(num_tiles,),                              # whole sequences per step
            in_specs=[
                pl.BlockSpec((BPT * L, Cin), lambda i: (i, 0)),   # x rows for this chunk
                pl.BlockSpec((3 * Cin, H),   lambda i: (0, 0)),   # conv1 weight (bf16, im2col)
                pl.BlockSpec((1, H),         lambda i: (0, 0)),   # conv1 bias (f32)
                pl.BlockSpec((3 * H, H),     lambda i: (0, 0)),   # conv2 weight (bf16, im2col)
                pl.BlockSpec((1, H),         lambda i: (0, 0)),   # conv2 bias (f32)
                pl.BlockSpec((H, O),         lambda i: (0, 0)),   # linear weight^T (bf16)
                pl.BlockSpec((1, O),         lambda i: (0, 0)),   # linear bias (f32)
            ],
            out_specs=pl.BlockSpec((BPT, O), lambda i: (i, 0)),
        ),
        compiler_params=pltpu.CompilerParams(
            dimension_semantics=("parallel",)),             # chunks are independent (v7x 2nd TC)
    )(x2d, w1f, b1f, w2f, b2f, wlf, blf)


def ref_forward(x, params):
    """Pure-JAX f32 reference matching the PyTorch forward semantics."""
    w1, b1, w2, b2, wl, bl = params

    def conv(v, w, b):                      # v: (B, L, C), w: (3, C, H)
        vp = jnp.pad(v, ((0, 0), (1, 1), (0, 0)))
        y = (jnp.einsum('blc,ch->blh', vp[:, :-2], w[0])
             + jnp.einsum('blc,ch->blh', vp[:, 1:-1], w[1])
             + jnp.einsum('blc,ch->blh', vp[:, 2:], w[2]))
        return y + b

    y = jax.nn.relu(conv(x, w1, b1))
    y = jax.nn.relu(conv(y, w2, b2))
    pooled = jnp.mean(y, axis=1)            # AdaptiveAvgPool1d(1).squeeze(-1)
    return pooled @ wl + bl


if __name__ == "__main__":
    # Module defaults: input_dim=3, hidden_dim=128, output_dim=768; small batch/seq.
    B, L, Cin, H, O = 2, 16, 3, 128, 768
    key = jax.random.PRNGKey(0)
    ks = jax.random.split(key, 7)
    x  = jax.random.normal(ks[0], (B, L, Cin), jnp.float32)
    w1 = jax.random.normal(ks[1], (3, Cin, H), jnp.float32) * 0.10
    b1 = jax.random.normal(ks[2], (1, H), jnp.float32) * 0.10
    w2 = jax.random.normal(ks[3], (3, H, H), jnp.float32) * 0.05
    b2 = jax.random.normal(ks[4], (1, H), jnp.float32) * 0.10
    wl = jax.random.normal(ks[5], (H, O), jnp.float32) * 0.05
    bl = jax.random.normal(ks[6], (1, O), jnp.float32) * 0.10
    params = (w1, b1, w2, b2, wl, bl)

    out = jax.block_until_ready(cnn_encoder(x, params))
    ref = ref_forward(x, params)

    assert out.shape == (B, O), out.shape
    err = float(jnp.max(jnp.abs(out - ref)))
    # Tolerance reflects bf16 quantization of the weights AND of the activations
    # fed to the three MXU matmuls (accumulation is f32); the conv/pool/linear
    # logic itself is exact.
    assert jnp.allclose(out, ref, atol=2e-2, rtol=2e-2), f"max abs err {err}"
    print("KERNEL_OK")
</pallas_src>

<mosaic_0001>
module attributes {stable_mosaic.version = 11 : i64} {
  func.func @_cnn_encoder_kernel(%arg0: i32, %arg1: memref<32x3xf32, #tpu.memory_space<vmem>>, %arg2: memref<9x128xbf16, #tpu.memory_space<vmem>>, %arg3: memref<1x128xf32, #tpu.memory_space<vmem>>, %arg4: memref<384x128xbf16, #tpu.memory_space<vmem>>, %arg5: memref<1x128xf32, #tpu.memory_space<vmem>>, %arg6: memref<128x768xbf16, #tpu.memory_space<vmem>>, %arg7: memref<1x768xf32, #tpu.memory_space<vmem>>, %arg8: memref<2x768xf32, #tpu.memory_space<vmem>>) attributes {dimension_semantics = [#tpu.dimension_semantics<parallel>], iteration_bounds = array<i64: 1>, scalar_prefetch = 0 : i64, scratch_operands = 0 : i64, tpu.core_type = #tpu.core_type<tc>, window_params = [{transform_indices = @transform_0, window_bounds = array<i64: 32, 3>}, {pipeline_mode = #tpu.pipeline_mode<synchronous>, transform_indices = @transform_1, window_bounds = array<i64: 9, 128>}, {pipeline_mode = #tpu.pipeline_mode<synchronous>, transform_indices = @transform_2, window_bounds = array<i64: 1, 128>}, {pipeline_mode = #tpu.pipeline_mode<synchronous>, transform_indices = @transform_3, window_bounds = array<i64: 384, 128>}, {pipeline_mode = #tpu.pipeline_mode<synchronous>, transform_indices = @transform_4, window_bounds = array<i64: 1, 128>}, {pipeline_mode = #tpu.pipeline_mode<synchronous>, transform_indices = @transform_5, window_bounds = array<i64: 128, 768>}, {pipeline_mode = #tpu.pipeline_mode<synchronous>, transform_indices = @transform_6, window_bounds = array<i64: 1, 768>}, {transform_indices = @transform_7, window_bounds = array<i64: 2, 768>}]} {
    %0 = tpu.iota {dimensions = array<i32: 0>} : vector<32x1xi32>
    %c16_i32 = arith.constant 16 : i32
    %c0_i32 = arith.constant 0 : i32
    %1 = arith.cmpi eq, %c16_i32, %c0_i32 : i32
    %c1_i32 = arith.constant 1 : i32
    %2 = arith.select %1, %c1_i32, %c16_i32 : i32
    %3 = vector.broadcast %2 : i32 to vector<32x1xi32>
    %4 = arith.remsi %0, %3 : vector<32x1xi32>
    %c0_i32_0 = arith.constant 0 : i32
    %5 = vector.broadcast %c0_i32_0 : i32 to vector<32x1xi32>
    %6 = arith.cmpi ne, %4, %5 : vector<32x1xi32>
    %c0_i32_1 = arith.constant 0 : i32
    %7 = vector.broadcast %c0_i32_1 : i32 to vector<32x1xi32>
    %8 = arith.cmpi slt, %4, %7 : vector<32x1xi32>
    %c0_i32_2 = arith.constant 0 : i32
    %9 = arith.cmpi slt, %2, %c0_i32_2 : i32
    %10 = vector.broadcast %9 : i1 to vector<32x1xi1>
    %11 = vector.broadcast %10 : vector<32x1xi1> to vector<32x1xi1>
    %12 = arith.xori %8, %11 : vector<32x1xi1>
    %13 = arith.andi %12, %6 : vector<32x1xi1>
    %14 = vector.broadcast %2 : i32 to vector<32x1xi32>
    %15 = arith.addi %4, %14 : vector<32x1xi32>
    %16 = arith.select %13, %15, %4 : vector<32x1xi1>, vector<32x1xi32>
    %c0_i32_3 = arith.constant 0 : i32
    %17 = vector.broadcast %c0_i32_3 : i32 to vector<32x1xi32>
    %18 = arith.cmpi ne, %16, %17 : vector<32x1xi32>
    %19 = arith.extui %18 : vector<32x1xi1> to vector<32x1xi32>
    %20 = arith.sitofp %19 : vector<32x1xi32> to vector<32x1xf32>
    %c15_i32 = arith.constant 15 : i32
    %21 = vector.broadcast %c15_i32 : i32 to vector<32x1xi32>
    %22 = arith.cmpi ne, %16, %21 : vector<32x1xi32>
    %23 = arith.extui %22 : vector<32x1xi1> to vector<32x1xi32>
    %24 = arith.sitofp %23 : vector<32x1xi32> to vector<32x1xf32>
    %c0 = arith.constant 0 : index
    %c0_4 = arith.constant 0 : index
    %25 = vector.load %arg1[%c0, %c0_4] : memref<32x3xf32, #tpu.memory_space<vmem>>, vector<32x3xf32>
    %c1_i32_5 = arith.constant 1 : i32
    %26 = tpu.dynamic_rotate %25 by %c1_i32_5 dim 0 : vector<32x3xf32>, i32 -> vector<32x3xf32>
    %27 = vector.broadcast %20 : vector<32x1xf32> to vector<32x3xf32>
    %28 = arith.mulf %26, %27 : vector<32x3xf32>
    %29 = arith.truncf %28 : vector<32x3xf32> to vector<32x3xbf16>
    %c31_i32 = arith.constant 31 : i32
    %30 = tpu.dynamic_rotate %25 by %c31_i32 dim 0 : vector<32x3xf32>, i32 -> vector<32x3xf32>
    %31 = vector.broadcast %24 : vector<32x1xf32> to vector<32x3xf32>
    %32 = arith.mulf %30, %31 : vector<32x3xf32>
    %33 = arith.truncf %32 : vector<32x3xf32> to vector<32x3xbf16>
    %34 = arith.truncf %25 : vector<32x3xf32> to vector<32x3xbf16>
    %35 = tpu.concatenate %29, %34, %33 in 1 : vector<32x3xbf16>, vector<32x3xbf16>, vector<32x3xbf16> -> vector<32x9xbf16>
    %c0_6 = arith.constant 0 : index
    %c0_7 = arith.constant 0 : index
    %36 = vector.load %arg2[%c0_6, %c0_7] : memref<9x128xbf16, #tpu.memory_space<vmem>>, vector<9x128xbf16>
    %cst = arith.constant dense<0.000000e+00> : vector<32x128xf32>
    %37 = tpu.matmul %35, %36, %cst {dimension_numbers = #tpu.dot_dimension_numbers<[1], [0], [0], [1], [0, 0, 1, 1], [], []>} : vector<32x9xbf16>, vector<9x128xbf16>, vector<32x128xf32> -> vector<32x128xf32>
    %c0_8 = arith.constant 0 : index
    %c0_9 = arith.constant 0 : index
    %38 = vector.load %arg3[%c0_8, %c0_9] : memref<1x128xf32, #tpu.memory_space<vmem>>, vector<1x128xf32>
    %39 = vector.broadcast %38 : vector<1x128xf32> to vector<32x128xf32>
    %40 = arith.addf %37, %39 : vector<32x128xf32>
    %cst_10 = arith.constant 0.000000e+00 : f32
    %41 = vector.broadcast %cst_10 : f32 to vector<32x128xf32>
    %42 = arith.maximumf %40, %41 : vector<32x128xf32>
    %c1_i32_11 = arith.constant 1 : i32
    %43 = tpu.dynamic_rotate %42 by %c1_i32_11 dim 0 : vector<32x128xf32>, i32 -> vector<32x128xf32>
    %44 = vector.broadcast %20 : vector<32x1xf32> to vector<32x128xf32>
    %45 = arith.mulf %43, %44 : vector<32x128xf32>
    %46 = arith.truncf %45 : vector<32x128xf32> to vector<32x128xbf16>
    %c31_i32_12 = arith.constant 31 : i32
    %47 = tpu.dynamic_rotate %42 by %c31_i32_12 dim 0 : vector<32x128xf32>, i32 -> vector<32x128xf32>
    %48 = vector.broadcast %24 : vector<32x1xf32> to vector<32x128xf32>
    %49 = arith.mulf %47, %48 : vector<32x128xf32>
    %50 = arith.truncf %49 : vector<32x128xf32> to vector<32x128xbf16>
    %51 = arith.truncf %42 : vector<32x128xf32> to vector<32x128xbf16>
    %52 = tpu.concatenate %46, %51, %50 in 1 : vector<32x128xbf16>, vector<32x128xbf16>, vector<32x128xbf16> -> vector<32x384xbf16>
    %c0_13 = arith.constant 0 : index
    %c0_14 = arith.constant 0 : index
    %53 = vector.load %arg4[%c0_13, %c0_14] : memref<384x128xbf16, #tpu.memory_space<vmem>>, vector<384x128xbf16>
    %cst_15 = arith.constant dense<0.000000e+00> : vector<32x128xf32>
    %54 = tpu.matmul %52, %53, %cst_15 {dimension_numbers = #tpu.dot_dimension_numbers<[1], [0], [0], [1], [0, 0, 1, 1], [], []>} : vector<32x384xbf16>, vector<384x128xbf16>, vector<32x128xf32> -> vector<32x128xf32>
    %c0_16 = arith.constant 0 : index
    %c0_17 = arith.constant 0 : index
    %55 = vector.load %arg5[%c0_16, %c0_17] : memref<1x128xf32, #tpu.memory_space<vmem>>, vector<1x128xf32>
    %56 = vector.broadcast %55 : vector<1x128xf32> to vector<32x128xf32>
    %57 = arith.addf %54, %56 : vector<32x128xf32>
    %cst_18 = arith.constant 0.000000e+00 : f32
    %58 = vector.broadcast %cst_18 : f32 to vector<32x128xf32>
    %59 = arith.maximumf %57, %58 : vector<32x128xf32>
    %60 = vector.shape_cast %59 : vector<32x128xf32> to vector<2x16x128xf32>
    %cst_19 = arith.constant dense<0.000000e+00> : vector<2x128xf32>
    %61 = vector.multi_reduction <add>, %60, %cst_19 [1] : vector<2x16x128xf32> to vector<2x128xf32>
    %cst_20 = arith.constant 1.600000e+01 : f32
    %62 = vector.broadcast %cst_20 : f32 to vector<2x128xf32>
    %63 = arith.divf %61, %62 : vector<2x128xf32>
    %64 = arith.truncf %63 : vector<2x128xf32> to vector<2x128xbf16>
    %c0_21 = arith.constant 0 : index
    %c0_22 = arith.constant 0 : index
    %65 = vector.load %arg6[%c0_21, %c0_22] : memref<128x768xbf16, #tpu.memory_space<vmem>>, vector<128x768xbf16>
    %cst_23 = arith.constant dense<0.000000e+00> : vector<2x768xf32>
    %66 = tpu.matmul %64, %65, %cst_23 {dimension_numbers = #tpu.dot_dimension_numbers<[1], [0], [0], [1], [0, 0, 1, 1], [], []>} : vector<2x128xbf16>, vector<128x768xbf16>, vector<2x768xf32> -> vector<2x768xf32>
    %c0_24 = arith.constant 0 : index
    %c0_25 = arith.constant 0 : index
    %67 = vector.load %arg7[%c0_24, %c0_25] : memref<1x768xf32, #tpu.memory_space<vmem>>, vector<1x768xf32>
    %68 = vector.broadcast %67 : vector<1x768xf32> to vector<2x768xf32>
    %69 = arith.addf %66, %68 : vector<2x768xf32>
    %c0_26 = arith.constant 0 : index
    %c0_27 = arith.constant 0 : index
    %70 = vector.load %arg8[%c0_26, %c0_27] : memref<2x768xf32, #tpu.memory_space<vmem>>, vector<2x768xf32>
    tpu.vector_store %arg8[%c0_26, %c0_27], %69 {strides = array<i32>} : memref<2x768xf32, #tpu.memory_space<vmem>>, vector<2x768xf32>,
    return
  }
  func.func @transform_0(%arg0: i32) -> (i32, i32) {
    %c0_i32 = arith.constant 0 : i32
    %c0_i32_0 = arith.constant 0 : i32
    return %arg0, %c0_i32 : i32, i32
  }
  func.func @transform_1(%arg0: i32) -> (i32, i32) {
    %c0_i32 = arith.constant 0 : i32
    %c0_i32_0 = arith.constant 0 : i32
    %c0_i32_1 = arith.constant 0 : i32
    return %c0_i32, %c0_i32_0 : i32, i32
  }
  func.func @transform_2(%arg0: i32) -> (i32, i32) {
    %c0_i32 = arith.constant 0 : i32
    %c0_i32_0 = arith.constant 0 : i32
    %c0_i32_1 = arith.constant 0 : i32
    return %c0_i32, %c0_i32_0 : i32, i32
  }
  func.func @transform_3(%arg0: i32) -> (i32, i32) {
    %c0_i32 = arith.constant 0 : i32
    %c0_i32_0 = arith.constant 0 : i32
    %c0_i32_1 = arith.constant 0 : i32
    return %c0_i32, %c0_i32_0 : i32, i32
  }
  func.func @transform_4(%arg0: i32) -> (i32, i32) {
    %c0_i32 = arith.constant 0 : i32
    %c0_i32_0 = arith.constant 0 : i32
    %c0_i32_1 = arith.constant 0 : i32
    return %c0_i32, %c0_i32_0 : i32, i32
  }
  func.func @transform_5(%arg0: i32) -> (i32, i32) {
    %c0_i32 = arith.constant 0 : i32
    %c0_i32_0 = arith.constant 0 : i32
    %c0_i32_1 = arith.constant 0 : i32
    return %c0_i32, %c0_i32_0 : i32, i32
  }
  func.func @transform_6(%arg0: i32) -> (i32, i32) {
    %c0_i32 = arith.constant 0 : i32
    %c0_i32_0 = arith.constant 0 : i32
    %c0_i32_1 = arith.constant 0 : i32
    return %c0_i32, %c0_i32_0 : i32, i32
  }
  func.func @transform_7(%arg0: i32) -> (i32, i32) {
    %c0_i32 = arith.constant 0 : i32
    %c0_i32_0 = arith.constant 0 : i32
    return %arg0, %c0_i32 : i32, i32
  }
}

</mosaic_0001>

<bundles_post_ra>
// kernel: tpu_custom_call.1
= control target key start
LH: loop header
LB: loop body
LE: loop exit
PB: predicated region body
PF: predicated region fallthrough
CT: control target
= control target key end

     0   :  { %12 = vsyncpa [#allocation3], 0  ;;  %s1699_s0 = inlined_call_operand.vmem [shape: f32[32,3], index: 0, kind: input, shape index: {}]   ;;  %s1700_s1 = inlined_call_operand.vmem [shape: bf16[9,128], index: 1, kind: input, shape index: {}]   ;;  %s1701_s2 = inlined_call_operand.vmem [shape: f32[1,128], index: 2, kind: input, shape index: {}]   ;;  %s1702_s3 = inlined_call_operand.hbm [shape: bf16[384,128], index: 3, kind: input, shape index: {}]   ;;  %s1703_s4 = inlined_call_operand.vmem [shape: f32[1,128], index: 4, kind: input, shape index: {}]   ;;  %s1704_s5 = inlined_call_operand.hbm [shape: bf16[128,768], index: 5, kind: input, shape index: {}]   ;;  %s1705_s6 = inlined_call_operand.vmem [shape: f32[1,768], index: 6, kind: input, shape index: {}]   ;;  %s1706_s7 = inlined_call_operand.hbm [shape: f32[2,768], index: 7, kind: output, shape index: {}]  }
   0x1   :  { %13 = vsyncpa [#allocation6], 0 }
   0x2   :  { %14 = vsyncpa [#allocation4], 0  ;;  %s25_s26 = sshll.u32 %s1702_s3, 4  ;;  %s1520_s27 = smov [#allocation2]   ;;  %s26_s26 = int_to_ptr.hbm [resolvable:$true] %s25_s26 }
   0x3   :  { %s27_s28 = sshll.u32 %s1520_s27, 4  ;;  %s40_s8 = sshll.u32 %s1704_s5, 4  ;;  %s28_s28 = int_to_ptr.vmem [resolvable:$true] %s27_s28  ;;  %s41_s8 = int_to_ptr.hbm [resolvable:$true] %s40_s8 }
   0x4   :  { %s1521_s9 = smov 64   ;;  %s1522_s10 = smov 4  }
   0x5   :  { %33 = dma.hbm_to_vmem [thread:$0]  %s26_s26, 3072, %s28_s28, [#allocation3], %s1521_s9, %s1521_s9, %s1522_s10  }
   0x6   :  { %s1523_s11 = smov [#allocation5]   ;;  %s1524_s13 = smov 384  }
   0x7   :  { %s42_s12 = sshll.u32 %s1523_s11, 4  ;;  %s1525_s14 = smov 24   ;;  %s43_s12 = int_to_ptr.vmem [resolvable:$true] %s42_s12 }
   0x8   :  { %48 = dma.hbm_to_vmem [thread:$0]  %s41_s8, 6144, %s43_s12, [#allocation6], %s1524_s13, %s1524_s13, %s1525_s14  }
   0x9   :  { %1514 = dma.done.wait [#allocation3], 3072  }
   0xa   :  { %1515 = vsyncadd [#allocation3], 4294964224 }
   0xb   :  { %1516 = dma.done.wait [#allocation6], 6144  }
   0xc   :  { %1517 = vsyncadd [#allocation6], 4294961152  ;;  %v60_v0 = vlaneseq  ;;  %v137_v5 = vld [vmem:[%s1699_s0] sm:$0xff]  ;;  %v1588_v6 = vld [vmem:[%s1699_s0 + $0x8] sm:$0xff]  ;;  %v1526_v17 = vmov 0.0   ;;  %s1528_s21 = smov 6  }
   0xd   :  { %v1593_v7 = vld [vmem:[%s1699_s0 + $0x10] sm:$0xff]  ;;  %v159_v8 = vrot.slane %v1588_v6, 1  ;;  %v175_v9 = vpack.c.bf16 %v137_v5, %v137_v5  ;;  %v176_v10 = vpack.c.bf16 %v1588_v6, %v1588_v6  ;;  %v158_v12 = vrot.slane %v137_v5, 1  ;;  %v1603_v14 = vld [vmem:[%s1699_s0 + $0x18] sm:$0xff]  ;;  %s1527_s0 = smov 3   ;;  %s1044_s9 = sshll.u32 %s1706_s7, 4  ;;  %s1045_s9 = int_to_ptr.hbm [resolvable:$true] %s1044_s9 }
   0xe   :  { %v1578_v1 = vshrl.u32 %v60_v0, 7  ;;  %v160_v13 = vrot.slane %v1593_v7, 1  ;;  %v161_v21 = vrot.slane %v1603_v14, 1  ;;  %v177_v22 = vpack.c.bf16 %v1593_v7, %v1593_v7  ;;  %v1061_v56 = vld [vmem:[%s1700_s1] sm:$0xf] }
   0xf   :  { %v193_v15 = vunpack.c.l.b16 %v175_v9  ;;  %v194_v16 = vunpack.c.l.b16 %v176_v10  ;;  %v178_v26 = vpack.c.bf16 %v1603_v14, %v1603_v14  ;;  %v141_v44 = vrot.slane %v137_v5, 7  ;;  %v1353_v57 = vld [vmem:[%s1700_s1] sm:$0x10] }
  0x10   :  { %v62_v2 = vadd.s32 8, %v1578_v1  ;;  %v64_v3 = vadd.s32 24, %v1578_v1  ;;  %vm162_vm0 = vcmp.lt.s32.totalorder %v1578_v1, 7  ;;  %v195_v27 = vunpack.c.l.b16 %v177_v22 }
  0x11   :  { %v164_v19 = vsel %vm162_vm0, %v159_v8, %v160_v13  ;;  %v165_v20 = vsel %vm162_vm0, %v158_v12, %v159_v8  ;;  %v197_v23 = vpack.c.b16 %v194_v16, %v193_v15  ;;  %v163_v28 = vsel %vm162_vm0, %v160_v13, %v161_v21  ;;  %v1369_v13 = vld [vmem:[#allocation2 + $0x78] sm:$0xff]  ;;  %v1367_v15 = vld [vmem:[#allocation2 + $0x68] sm:$0xff] }
  0x12   :  { %v76_v4 = vand.u32 15, %v62_v2  ;;  %v90_v11 = vand.u32 15, %v64_v3  ;;  %v171_v25 = vpack.c.bf16 %v165_v20, %v165_v20  ;;  %v166_v29 = vsel %vm162_vm0, %v161_v21, %v158_v12  ;;  %562 = vmatpush.bf16.msra.mxu2 %v1369_v13 }
  0x13   :  { %199 = vrot.lane.b32.xlu0 %v197_v23, %s1527_s0  ;;  %v196_v32 = vunpack.c.l.b16 %v178_v26  ;;  %v173_v35 = vpack.c.bf16 %v163_v28, %v163_v28  ;;  %v69_v43 = vand.u32 15, %v1578_v1  ;;  %v144_v45 = vrot.slane %v1603_v14, 7  ;;  %v1365_v26 = vld [vmem:[#allocation2 + $0x58] sm:$0xff]  ;;  %v1364_v28 = vld [vmem:[#allocation2 + $0x50] sm:$0xff] }
  0x14   :  { %vm126_vm1 = vcmp.ne.s32.totalorder %v76_v4, 15  ;;  %vm128_vm2 = vcmp.ne.s32.totalorder %v90_v11, 15  ;;  %v207_v31 = vunpack.c.l.b16 %v171_v25  ;;  %vm145_vm4 = vcmp.lt.s32.totalorder %v1578_v1, 1  ;;  %v1377_v25 = vld [vmem:[#allocation2 + $0xb8] sm:$0xff] }
  0x15   :  { %v1605_v18 = vsel %vm126_vm1, 1.0, %v1526_v17  ;;  %v1621_v33 = vsel %vm128_vm2, 1.0, %v1526_v17  ;;  %v198_v37 = vpack.c.b16 %v196_v32, %v195_v27  ;;  %v209_v40 = vunpack.c.l.b16 %v173_v35  ;;  %581 = vmatpush.bf16.msra.mxu3 %v1377_v25  ;;  %v1376_v27 = vld [vmem:[#allocation2 + $0xb0] sm:$0xff]  ;;  %v1362_v35 = vld [vmem:[#allocation2 + $0x40] sm:$0xff] }
  0x16   :  { %v168_v24 = vmul.f32 %v1605_v18, %v164_v19  ;;  %v170_v34 = vmul.f32 %v1621_v33, %v166_v29  ;;  %vm113_vm3 = vcmp.ne.s32.totalorder %v69_v43, 0  ;;  %v142_v46 = vrot.slane %v1588_v6, 7  ;;  %v1361_v29 = vld [vmem:[#allocation2 + $0x38] sm:$0xff]  ;;  %v1360_v32 = vld [vmem:[#allocation2 + $0x30] sm:$0xff]  ;;  %v1370_v43 = vld [vmem:[#allocation2 + $0x80] sm:$0xff] }
  0x17   :  { %201 = vrot.lane.b32.xlu1 %v198_v37, %s1527_s0  ;;  %v1628_v47 = vsel %vm113_vm3, 1.0, %v1526_v17  ;;  %v149_v48 = vsel %vm145_vm4, %v144_v45, %v141_v44  ;;  %vm245_vm5 = vcmask 1043456   ;;  %vm246_vm6 = vcmask 1044480   ;;  %543 = vmatpush.bf16.msra.mxu1 %v1361_v29  ;;  %v1373_v37 = vld [vmem:[#allocation2 + $0x98] sm:$0xff] }
  0x18   :  { %v172_v30 = vpack.c.bf16 %v168_v24, %v168_v24  ;;  %v174_v38 = vpack.c.bf16 %v170_v34, %v170_v34  ;;  %v150_v49 = vmul.f32 %v1628_v47, %v149_v48  ;;  %v148_v50 = vsel %vm145_vm4, %v141_v44, %v142_v46  ;;  %v1366_v24 = vld [vmem:[#allocation2 + $0x60] sm:$0xff] }
  0x19   :  { %v155_v52 = vpack.c.bf16 %v148_v50, %v148_v50  ;;  %v1062_v58 = vor.u32 %v1353_v57, %v1061_v56  ;;  %v1529_v59 = vmov 65535   ;;  %v63_v61 = vadd.s32 16, %v1578_v1  ;;  %582 = vmatpush.bf16.msra.mxu3 %v1376_v27  ;;  %v1374_v34 = vld [vmem:[#allocation2 + $0xa0] sm:$0xff] }
  0x1a   :  { %v208_v36 = vunpack.c.l.b16 %v172_v30  ;;  %v210_v41 = vunpack.c.l.b16 %v174_v38  ;;  %v154_v51 = vpack.c.bf16 %v150_v49, %v150_v49  ;;  %v247_v60 = vsel %vm245_vm5, 4294967295, %v1529_v59  ;;  %v1375_v30 = vld [vmem:[#allocation2 + $0xa8] sm:$0xff]  ;;  %v1358_v38 = vld [vmem:[#allocation2 + $0x20] sm:$0xff] }
  0x1b   :  { %v184_v54 = vunpack.c.l.b16 %v155_v52  ;;  %v248_v62 = vsel %vm246_vm6, %v247_v60, 0  ;;  %v83_v0 = vand.u32 15, %v63_v61  ;;  %v143_v2 = vrot.slane %v1593_v7, 7  ;;  %v1368_v7 = vld [vmem:[#allocation2 + $0x70] sm:$0xff]  ;;  %544 = vmatpush.bf16.msra.mxu1 %v1360_v32  ;;  %v1438_v44 = vld [vmem:[%s1701_s2] ss:$0 sm:$0xff] }
  0x1c   :  { %v211_v39 = vpack.c.b16 %v208_v36, %v207_v31  ;;  %v212_v42 = vpack.c.b16 %v210_v41, %v209_v40  ;;  %v183_v53 = vunpack.c.l.b16 %v154_v51  ;;  %v250_v63 = vand.u32 %v1062_v58, %v248_v62  ;;  %563 = vmatpush.bf16.msra.mxu2 %v1368_v7  ;;  %v1363_v31 = vld [vmem:[#allocation2 + $0x48] sm:$0xff]  ;;  %v1357_v40 = vld [vmem:[#allocation2 + $0x18] sm:$0xff]  ;;  %v1354_v49 = vld [vmem:[#allocation2] sm:$0xff] }
  0x1d   :  { %vm115_vm7 = vcmp.ne.s32.totalorder %v83_v0, 0  ;;  %v146_v4 = vsel %vm145_vm4, %v143_v2, %v144_v45  ;;  %v147_v5 = vsel %vm145_vm4, %v142_v46, %v143_v2  ;;  %vm217_vm8 = vcmask 23552   ;;  %583 = vmatpush.bf16.msra.mxu3 %v1375_v30  ;;  %v1359_v36 = vld [vmem:[#allocation2 + $0x28] sm:$0xff]  ;;  %v1307_v1 = vld [vmem:[#allocation5 + $0x120] sm:$0xf] }
  0x1e   :  { %213 = vrot.lane.b32.xlu0 %v211_v39, %s1528_s21  ;;  %v187_v55 = vpack.c.b16 %v184_v54, %v183_v53  ;;  %259 = vmatpush.bf16.msra.mxu0 %v250_v63  ;;  %v1644_v3 = vsel %vm115_vm7, 1.0, %v1526_v17  ;;  %v157_v8 = vpack.c.bf16 %v146_v4, %v146_v4  ;;  %vm224_vm9 = vcmask 48128   ;;  %v1372_v39 = vld [vmem:[#allocation2 + $0x90] sm:$0xff]  ;;  %v1371_v41 = vld [vmem:[#allocation2 + $0x88] sm:$0xff] }
  0x1f   :  { %215 = vrot.lane.b32.xlu1 %v212_v42, %s1528_s21  ;;  %v152_v6 = vmul.f32 %v1644_v3, %v147_v5  ;;  %vm240_vm10 = vcmask 72704   ;;  %545 = vmatpush.bf16.msra.mxu1 %v1359_v36  ;;  %v1356_v42 = vld [vmem:[#allocation2 + $0x10] sm:$0xff]  ;;  %v1355_v45 = vld [vmem:[#allocation2 + $0x8] sm:$0xff]  ;;  %vm695_vm12 = vcmask 1041409   ;;  %vm1027_vm13 = vcmask 1041408  }
  0x20   :  { %v186_v10 = vunpack.c.l.b16 %v157_v8  ;;  %564 = vmatpush.bf16.msra.mxu2 %v1367_v15  ;;  %vm1029_vm14 = vcmask 1045508  }
  0x21   :  { %v156_v9 = vpack.c.bf16 %v152_v6, %v152_v6  ;;  %584 = vmatpush.bf16.msra.mxu3 %v1374_v34 }
  0x23   :  { %v185_v11 = vunpack.c.l.b16 %v156_v9  ;;  %546 = vmatpush.bf16.msra.mxu1 %v1358_v38 }
  0x24   :  { %565 = vmatpush.bf16.msra.mxu2 %v1366_v24 }
  0x25   :  { %v188_v12 = vpack.c.b16 %v186_v10, %v185_v11  ;;  %585 = vmatpush.bf16.msra.mxu3 %v1373_v37 }
  0x27   :  { %547 = vmatpush.bf16.msra.mxu1 %v1357_v40 }
  0x28   :  { %566 = vmatpush.bf16.msra.mxu2 %v1365_v26 }
  0x29   :  { %586 = vmatpush.bf16.msra.mxu3 %v1372_v39 }
  0x2b   :  { %548 = vmatpush.bf16.msra.mxu1 %v1356_v42 }
  0x2c   :  { %567 = vmatpush.bf16.msra.mxu2 %v1364_v28 }
  0x2d   :  { %587 = vmatpush.bf16.msra.mxu3 %v1371_v41 }
  0x2f   :  { %549 = vmatpush.bf16.msra.mxu1 %v1355_v45 }
  0x30   :  { %568 = vmatpush.bf16.msra.mxu2 %v1363_v31 }
  0x31   :  { %588 = vmatpush.bf16.msra.mxu3 %v1370_v43 }
  0x33   :  { %550 = vmatpush.bf16.msra.mxu1 %v1354_v49  ;;  %v1423_v49 = vld [vmem:[#allocation5 + $0x164] sm:$0xf0] }
  0x34   :  { %569 = vmatpush.bf16.msra.mxu2 %v1362_v35 }
  0x85   :  { %v200_v14 = vpop.permute.xlu0 %199 }
  0x86   :  { %v220_v16 = vsel %vm217_vm8, %v187_v55, %v200_v14 }
  0x89   :  { %v202_v20 = vpop.permute.xlu1 %201 }
  0x8a   :  { %v223_v21 = vsel %vm217_vm8, %v188_v12, %v202_v20 }
  0x90   :  { %v214_v17 = vpop.permute.xlu0 %213 }
  0x91   :  { %v226_v19 = vsel %vm224_vm9, %v220_v16, %v214_v17  ;;  %v216_v22 = vpop.permute.xlu1 %215 }
  0x92   :  { %1063 = vmatmul.msk.bf16.vlgmr.msra.gmra.mxu0 %vm240_vm10, %v226_v19  ;;  %v228_v23 = vsel %vm224_vm9, %v223_v21, %v216_v22 }
  0xa2   :  { %1064 = vmatmul.msk.bf16.gmra.mxu0 %vm240_vm10, %v228_v23 }
 0x10f   :  { %v261_v46 = vpop.f32.mrf.mxu0 }
 0x110   :  { %v262_v48 = vadd.f32 %v1438_v44, %v261_v46 }
 0x112   :  { %v271_v50 = vmax.f32 %v262_v48, 0.0  ;;  %v1331_v48 = vld [vmem:[#allocation5 + $0x150] sm:$0xf] }
 0x114   :  { %v307_v54 = vpack.c.bf16 %v271_v50, %v271_v50  ;;  %v291_v62 = vrot.slane %v271_v50, 1  ;;  %v275_v12 = vrot.slane %v271_v50, 7  ;;  %v1420_v50 = vld [vmem:[#allocation5 + $0x154] sm:$0xf] }
 0x116   :  { %v327_v56 = vunpack.c.l.b16 %v307_v54  ;;  %v1417_v54 = vld [vmem:[#allocation5 + $0x134] sm:$0xf0] }
 0x117   :  { %v263_v51 = vpop.f32.mrf.mxu0 }
 0x118   :  { %v264_v52 = vadd.f32 %v1438_v44, %v263_v51  ;;  %v1332_v51 = vor.u32 %v1423_v49, %v1331_v48  ;;  %v1267_v48 = vld [vmem:[#allocation5 + $0xc8] sm:$0xf]  ;;  %v1406_v49 = vld [vmem:[#allocation5 + $0xdc] sm:$0xf0] }
 0x11a   :  { %v272_v53 = vmax.f32 %v264_v52, 0.0  ;;  %v1333_v52 = vld [vmem:[#allocation5 + $0x168] sm:$0xf0]  ;;  %939 = vmatpush.bf16.msrb.mxu0 %v1332_v51  ;;  %v1268_v51 = vor.u32 %v1406_v49, %v1267_v48 }
 0x11c   :  { %v308_v55 = vpack.c.bf16 %v272_v53, %v272_v53  ;;  %v292_v59 = vrot.slane %v272_v53, 1  ;;  %v276_v9 = vrot.slane %v272_v53, 7  ;;  %v1336_v53 = vor.u32 %v1420_v50, %v1333_v52  ;;  %v1403_v52 = vld [vmem:[#allocation5 + $0xcc] sm:$0xf] }
 0x11e   :  { %v328_v57 = vunpack.c.l.b16 %v308_v55  ;;  %v297_v2 = vsel %vm162_vm0, %v291_v62, %v292_v59  ;;  %v281_v20 = vsel %vm145_vm4, %v275_v12, %v276_v9  ;;  %952 = vmatpush.bf16.msrb.mxu1 %v1336_v53  ;;  %v1414_v55 = vld [vmem:[#allocation5 + $0x124] sm:$0xf] }
 0x11f   :  { %v266_v58 = vpop.f32.mrf.mxu0  ;;  %v303_v8 = vpack.c.bf16 %v297_v2, %v297_v2  ;;  %v288_v26 = vpack.c.bf16 %v281_v20, %v281_v20  ;;  %v1405_v2 = vld [vmem:[#allocation5 + $0xd4] sm:$0xf0]  ;;  %v1315_v20 = vld [vmem:[#allocation5 + $0x128] sm:$0xf]  ;;  %v1269_v53 = vld [vmem:[#allocation5 + $0xe0] sm:$0xf0] }
 0x120   :  { %v267_v60 = vadd.f32 %v1438_v44, %v266_v58  ;;  %v331_v61 = vpack.c.b16 %v328_v57, %v327_v56  ;;  %v1309_v56 = vld [vmem:[#allocation5 + $0x138] sm:$0xf0]  ;;  %v1283_v58 = vld [vmem:[#allocation5 + $0xf0] sm:$0xf] }
 0x121   :  { %v339_v14 = vunpack.c.l.b16 %v303_v8  ;;  %v316_v31 = vunpack.c.l.b16 %v288_v26  ;;  %v1312_v57 = vor.u32 %v1414_v55, %v1309_v56  ;;  %v1339_v8 = vld [vmem:[#allocation5 + $0x158] sm:$0xf]  ;;  %v1677_v26 = vld [vmem:[%s1703_s4] ss:$0 sm:$0xff]  ;;  %v1378_v56 = vld [vmem:[#allocation5 + $0x4] sm:$0xf] }
 0x122   :  { %v273_v63 = vmax.f32 %v267_v60, 0.0  ;;  %570 = vmatmul.bf16.vlgmr.msra.gmra.mxu2 %v331_v61  ;;  %v1408_v60 = vld [vmem:[#allocation5 + $0xf4] sm:$0xf]  ;;  %v1163_v55 = vld [vmem:[#allocation5] sm:$0xf] }
 0x123   :  { %953 = vmatpush.bf16.msrb.mxu1 %v1312_v57 }
 0x124   :  { %v293_v0 = vrot.slane %v273_v63, 1  ;;  %v309_v7 = vpack.c.bf16 %v273_v63, %v273_v63  ;;  %v277_v32 = vrot.slane %v273_v63, 7 }
 0x126   :  { %v296_v4 = vsel %vm162_vm0, %v292_v59, %v293_v0  ;;  %v329_v22 = vunpack.c.l.b16 %v309_v7  ;;  %v280_v38 = vsel %vm145_vm4, %v276_v9, %v277_v32  ;;  %v1411_v59 = vld [vmem:[#allocation5 + $0x104] sm:$0xf0] }
 0x127   :  { %v268_v5 = vpop.f32.mrf.mxu0  ;;  %v300_v6 = vmul.f32 %v1605_v18, %v296_v4  ;;  %v1284_v61 = vor.u32 %v1411_v59, %v1283_v58  ;;  %v1402_v4 = vld [vmem:[#allocation5 + $0xc4] sm:$0xf]  ;;  %v1165_v59 = vld [vmem:[#allocation5 + $0x18] sm:$0xf0] }
 0x128   :  { %v269_v10 = vadd.f32 %v1438_v44, %v268_v5 }
 0x129   :  { %v304_v11 = vpack.c.bf16 %v300_v6, %v300_v6  ;;  %v1261_v6 = vld [vmem:[#allocation5 + $0xd8] sm:$0xf0] }
 0x12a   :  { %v274_v13 = vmax.f32 %v269_v10, 0.0  ;;  %v1264_v9 = vor.u32 %v1402_v4, %v1261_v6  ;;  %v1424_v10 = vld [vmem:[#allocation5 + $0x16c] sm:$0xf0]  ;;  %v1245_v4 = vld [vmem:[#allocation5 + $0xb0] sm:$0xf0] }
 0x12b   :  { %v340_v15 = vunpack.c.l.b16 %v304_v11  ;;  %v1421_v11 = vld [vmem:[#allocation5 + $0x15c] sm:$0xf] }
 0x12c   :  { %v278_v16 = vrot.slane %v274_v13, 7  ;;  %v294_v17 = vrot.slane %v274_v13, 1  ;;  %v310_v19 = vpack.c.bf16 %v274_v13, %v274_v13  ;;  %v1340_v13 = vor.u32 %v1424_v10, %v1339_v8  ;;  %v1425_v10 = vld [vmem:[#allocation5 + $0x174] sm:$0xf0] }
 0x12d   :  { %v343_v21 = vpack.c.b16 %v340_v15, %v339_v14  ;;  %v1235_v14 = vld [vmem:[#allocation5 + $0x90] sm:$0xf]  ;;  %v1399_v15 = vld [vmem:[#allocation5 + $0xa4] sm:$0xf0] }
 0x12e   :  { %v330_v23 = vunpack.c.l.b16 %v310_v19  ;;  %v282_v18 = vsel %vm145_vm4, %v278_v16, %v275_v12  ;;  %v298_v24 = vsel %vm162_vm0, %v294_v17, %v291_v62  ;;  %v295_v34 = vsel %vm162_vm0, %v293_v0, %v294_v17  ;;  %v1285_v62 = vld [vmem:[#allocation5 + $0x108] sm:$0xf0]  ;;  %v1259_v0 = vld [vmem:[#allocation5 + $0xc0] sm:$0xf]  ;;  %v1341_v12 = vld [vmem:[#allocation5 + $0x170] sm:$0xf0]  ;;  %965 = vmatpush.bf16.msrb.mxu2 %v1340_v13 }
 0x12f   :  { %589 = vmatmul.bf16.vlgmr.msra.gmra.mxu3 %v343_v21  ;;  %v283_v25 = vmul.f32 %v1628_v47, %v282_v18  ;;  %v302_v29 = vmul.f32 %v1621_v33, %v298_v24  ;;  %v305_v37 = vpack.c.bf16 %v295_v34, %v295_v34  ;;  %v279_v39 = vsel %vm145_vm4, %v277_v32, %v278_v16  ;;  %v1396_v16 = vld [vmem:[#allocation5 + $0x94] sm:$0xf]  ;;  %v1237_v19 = vld [vmem:[#allocation5 + $0xa8] sm:$0xf0]  ;;  %v1418_v21 = vld [vmem:[#allocation5 + $0x13c] sm:$0xf0] }
 0x130   :  { %v332_v27 = vpack.c.b16 %v330_v23, %v329_v22  ;;  %v285_v33 = vmul.f32 %v1644_v3, %v280_v38  ;;  %v290_v42 = vpack.c.bf16 %v279_v39, %v279_v39  ;;  %v1308_v3 = vor.u32 %v1417_v54, %v1307_v1  ;;  %v1415_v24 = vld [vmem:[#allocation5 + $0x12c] sm:$0xf]  ;;  %v1213_v34 = vld [vmem:[#allocation5 + $0x78] sm:$0xf0] }
 0x131   :  { %v287_v28 = vpack.c.bf16 %v283_v25, %v283_v25  ;;  %v306_v36 = vpack.c.bf16 %v302_v29, %v302_v29  ;;  %v341_v40 = vunpack.c.l.b16 %v305_v37  ;;  %v1288_v63 = vor.u32 %v1408_v60, %v1285_v62  ;;  %v1317_v25 = vld [vmem:[#allocation5 + $0x140] sm:$0xf0]  ;;  %v1211_v29 = vld [vmem:[#allocation5 + $0x60] sm:$0xf]  ;;  %v1409_v39 = vld [vmem:[#allocation5 + $0xfc] sm:$0xf] }
 0x132   :  { %575 = vmatmul.bf16.gmra.mxu2 %v332_v27  ;;  %v289_v43 = vpack.c.bf16 %v285_v33, %v285_v33  ;;  %v318_v44 = vunpack.c.l.b16 %v290_v42  ;;  %940 = vmatpush.bf16.msrb.mxu0 %v1308_v3  ;;  %v1260_v5 = vor.u32 %v1405_v2, %v1259_v0  ;;  %v1344_v7 = vor.u32 %v1421_v11, %v1341_v12  ;;  %v1387_v42 = vld [vmem:[#allocation5 + $0x44] sm:$0xf0]  ;;  %v1381_v3 = vld [vmem:[#allocation5 + $0x14] sm:$0xf0]  ;;  %v1400_v0 = vld [vmem:[#allocation5 + $0xac] sm:$0xf0] }
 0x133   :  { %v315_v30 = vunpack.c.l.b16 %v287_v28  ;;  %v342_v47 = vunpack.c.l.b16 %v306_v36  ;;  %954 = vmatpush.bf16.msrb.mxu1 %v1288_v63  ;;  %v1236_v17 = vor.u32 %v1399_v15, %v1235_v14  ;;  %v1240_v23 = vor.u32 %v1396_v16, %v1237_v19  ;;  %v1412_v36 = vld [vmem:[#allocation5 + $0x10c] sm:$0xf0]  ;;  %v1243_v60 = vld [vmem:[#allocation5 + $0x98] sm:$0xf]  ;;  %v1397_v2 = vld [vmem:[#allocation5 + $0x9c] sm:$0xf] }
 0x134   :  { %v317_v45 = vunpack.c.l.b16 %v289_v43  ;;  %978 = vmatpush.bf16.msrb.mxu3 %v1344_v7  ;;  %v1316_v18 = vor.u32 %v1418_v21, %v1315_v20  ;;  %v1320_v27 = vor.u32 %v1415_v24, %v1317_v25  ;;  %v1384_v43 = vld [vmem:[#allocation5 + $0x34] sm:$0xf]  ;;  %v1272_v1 = vor.u32 %v1403_v52, %v1269_v53  ;;  %v1422_v11 = vld [vmem:[#allocation5 + $0x164] sm:$0xf]  ;;  %v1349_v13 = vld [vmem:[#allocation5 + $0x178] sm:$0xf0] }
 0x135   :  { %v319_v35 = vpack.c.b16 %v316_v31, %v315_v30  ;;  %v344_v41 = vpack.c.b16 %v342_v47, %v341_v40  ;;  %v1393_v30 = vld [vmem:[#allocation5 + $0x74] sm:$0xf0]  ;;  %v1390_v31 = vld [vmem:[#allocation5 + $0x64] sm:$0xf]  ;;  %v1293_v40 = vld [vmem:[#allocation5 + $0x110] sm:$0xf0]  ;;  %v1164_v58 = vor.u32 %v1381_v3, %v1163_v55  ;;  %v1168_v63 = vor.u32 %v1378_v56, %v1165_v59 }
 0x136   :  { %v320_v46 = vpack.c.b16 %v318_v44, %v317_v45  ;;  %941 = vmatpush.bf16.msrb.mxu0 %v1284_v61  ;;  %966 = vmatpush.bf16.msrb.mxu2 %v1316_v18  ;;  %v1212_v32 = vor.u32 %v1393_v30, %v1211_v29  ;;  %v1216_v38 = vor.u32 %v1390_v31, %v1213_v34  ;;  %v1219_v16 = vld [vmem:[#allocation5 + $0x68] sm:$0xf]  ;;  %v1391_v19 = vld [vmem:[#allocation5 + $0x6c] sm:$0xf]  ;;  %v1221_v21 = vld [vmem:[#allocation5 + $0x80] sm:$0xf0] }
 0x137   :  { %551 = vmatmul.bf16.vlgmr.msra.gmra.mxu1 %v319_v35  ;;  %v1291_v35 = vld [vmem:[#allocation5 + $0xf8] sm:$0xf]  ;;  %v1296_v33 = vor.u32 %v1409_v39, %v1293_v40  ;;  %v1244_v6 = vor.u32 %v1400_v0, %v1243_v60  ;;  %v1248_v8 = vor.u32 %v1397_v2, %v1245_v4  ;;  %v1352_v15 = vor.u32 %v1422_v11, %v1349_v13  ;;  %v1325_v29 = vld [vmem:[#allocation5 + $0x148] sm:$0xf0]  ;;  %v1197_v39 = vld [vmem:[#allocation5 + $0x50] sm:$0xf0] }
 0x138   :  { %955 = vmatpush.bf16.msrb.mxu1 %v1264_v9  ;;  %979 = vmatpush.bf16.msrb.mxu3 %v1320_v27  ;;  %v1292_v47 = vor.u32 %v1412_v36, %v1291_v35  ;;  %v1347_v9 = vld [vmem:[#allocation5 + $0x160] sm:$0xf]  ;;  %v1224_v24 = vor.u32 %v1391_v19, %v1221_v21  ;;  %v1416_v27 = vld [vmem:[#allocation5 + $0x134] sm:$0xf]  ;;  %v1195_v34 = vld [vmem:[#allocation5 + $0x38] sm:$0xf] }
 0x139   :  { %v1348_v12 = vor.u32 %v1425_v10, %v1347_v9  ;;  %v1328_v30 = vor.u32 %v1416_v27, %v1325_v29  ;;  %v1388_v35 = vld [vmem:[#allocation5 + $0x4c] sm:$0xf0]  ;;  %v1299_v40 = vld [vmem:[#allocation5 + $0x100] sm:$0xf]  ;;  %v1277_v59 = vld [vmem:[#allocation5 + $0xe8] sm:$0xf0] }
 0x13a   :  { %942 = vmatpush.bf16.msrb.mxu0 %v1260_v5  ;;  %967 = vmatpush.bf16.msrb.mxu2 %v1292_v47  ;;  %v1385_v47 = vld [vmem:[#allocation5 + $0x3c] sm:$0xf]  ;;  %v1382_v52 = vld [vmem:[#allocation5 + $0x1c] sm:$0xf0]  ;;  %v1275_v55 = vld [vmem:[#allocation5 + $0xd0] sm:$0xf] }
 0x13b   :  { %v1251_v0 = vld [vmem:[#allocation5 + $0xa0] sm:$0xf]  ;;  %v1401_v2 = vld [vmem:[#allocation5 + $0xb4] sm:$0xf0]  ;;  %v1253_v9 = vld [vmem:[#allocation5 + $0xb8] sm:$0xf0] }
 0x13c   :  { %956 = vmatpush.bf16.msrb.mxu1 %v1240_v23  ;;  %980 = vmatpush.bf16.msrb.mxu3 %v1296_v33  ;;  %v1419_v23 = vld [vmem:[#allocation5 + $0x144] sm:$0xf0]  ;;  %v1205_v27 = vld [vmem:[#allocation5 + $0x58] sm:$0xf0] }
 0x13d   :  { %v1395_v13 = vld [vmem:[#allocation5 + $0x84] sm:$0xf0] }
 0x13e   :  { %943 = vmatpush.bf16.msrb.mxu0 %v1236_v17  ;;  %968 = vmatpush.bf16.msrb.mxu2 %v1268_v51  ;;  %v1394_v17 = vld [vmem:[#allocation5 + $0x7c] sm:$0xf0]  ;;  %v1171_v51 = vld [vmem:[#allocation5 + $0x8] sm:$0xf] }
 0x13f   :  { %594 = vmatmul.bf16.gmra.mxu3 %v344_v41  ;;  %v1187_v41 = vld [vmem:[#allocation5 + $0x30] sm:$0xf]  ;;  %v1220_v20 = vor.u32 %v1394_v17, %v1219_v16  ;;  %v1172_v53 = vor.u32 %v1382_v52, %v1171_v51 }
 0x140   :  { %957 = vmatpush.bf16.msrb.mxu1 %v1216_v38  ;;  %v1188_v45 = vor.u32 %v1387_v42, %v1187_v41  ;;  %981 = vmatpush.bf16.msrb.mxu3 %v1272_v1  ;;  %v1196_v38 = vor.u32 %v1388_v35, %v1195_v34  ;;  %v1200_v41 = vor.u32 %v1385_v47, %v1197_v39  ;;  %v1413_v42 = vld [vmem:[#allocation5 + $0x114] sm:$0xf0]  ;;  %v1379_v1 = vld [vmem:[#allocation5 + $0xc] sm:$0xf] }
 0x141   :  { %v1181_v47 = vld [vmem:[#allocation5 + $0x28] sm:$0xf0] }
 0x142   :  { %944 = vmatpush.bf16.msrb.mxu0 %v1212_v32  ;;  %969 = vmatpush.bf16.msrb.mxu2 %v1244_v6  ;;  %v1530_v32 = vmov 16.0   ;;  %v1252_v6 = vor.u32 %v1401_v2, %v1251_v0 }
 0x143   :  { %1440 = vrcp.f32 %v1530_v32 }
 0x144   :  { %982 = vmatpush.bf16.msrb.mxu3 %v1248_v8  ;;  %v1398_v8 = vld [vmem:[#allocation5 + $0xa4] sm:$0xf] }
 0x145   :  { %v1256_v11 = vor.u32 %v1398_v8, %v1253_v9 }
 0x146   :  { %945 = vmatpush.bf16.msrb.mxu0 %v1188_v45  ;;  %970 = vmatpush.bf16.msrb.mxu2 %v1220_v20 }
 0x147   :  { %556 = vmatmul.bf16.gmra.mxu1 %v320_v46  ;;  %v1189_v46 = vld [vmem:[#allocation5 + $0x48] sm:$0xf0] }
 0x148   :  { %v1192_v50 = vor.u32 %v1384_v43, %v1189_v46  ;;  %983 = vmatpush.bf16.msrb.mxu3 %v1224_v24  ;;  %v1410_v43 = vld [vmem:[#allocation5 + $0x104] sm:$0xf]  ;;  %v1300_v46 = vor.u32 %v1413_v42, %v1299_v40  ;;  %v1203_v24 = vld [vmem:[#allocation5 + $0x40] sm:$0xf] }
 0x149   :  { %v1682_v3 = vpop.eup %1440 }
 0x14a   :  { %958 = vmatpush.bf16.msrb.mxu1 %v1192_v50  ;;  %946 = vmatpush.bf16.msrb.mxu0 %v1164_v58  ;;  %v1404_v58 = vld [vmem:[#allocation5 + $0xd4] sm:$0xf]  ;;  %v619_v4 = vmul.f32 16.0, %v1682_v3  ;;  %vm623_vm11 = vweird.f32 %v1682_v3 }
 0x14b   :  { %971 = vmatpush.bf16.msrb.mxu2 %v1196_v38  ;;  %v1380_v38 = vld [vmem:[#allocation5 + $0x14] sm:$0xf] }
 0x14c   :  { %984 = vmatpush.bf16.msrb.mxu3 %v1200_v41  ;;  %v620_v20 = vsub.f32 1.0, %v619_v4 }
 0x14e   :  { %959 = vmatpush.bf16.msrb.mxu1 %v1168_v63  ;;  %991 = vmatpush.bf16.msra.mxu0 %v1348_v12  ;;  %v1227_v12 = vld [vmem:[#allocation5 + $0x70] sm:$0xf] }
 0x14f   :  { %972 = vmatpush.bf16.msrb.mxu2 %v1172_v53 }
 0x152   :  { %1004 = vmatpush.bf16.msra.mxu1 %v1352_v15  ;;  %v1229_v15 = vld [vmem:[#allocation5 + $0x88] sm:$0xf0] }
 0x156   :  { %1005 = vmatpush.bf16.msra.mxu1 %v1328_v30 }
 0x1a5   :  { %v571_v22 = vpop.f32.mrf.mxu2 }
 0x1ad   :  { %v573_v54 = vpop.f32.mrf.mxu2 }
 0x1b2   :  { %v590_v28 = vpop.f32.mrf.mxu3 }
 0x1b4   :  { %v552_v37 = vpop.f32.mrf.mxu1 }
 0x1b5   :  { %v553_v44 = vadd.f32 %v1677_v26, %v552_v37  ;;  %v576_v36 = vpop.f32.mrf.mxu2 }
 0x1b7   :  { %v572_v57 = vadd.f32 %v571_v22, %v553_v44  ;;  %v1323_v22 = vld [vmem:[#allocation5 + $0x130] sm:$0xf]  ;;  %v1301_v44 = vld [vmem:[#allocation5 + $0x118] sm:$0xf0] }
 0x1b8   :  { %v1324_v25 = vor.u32 %v1419_v23, %v1323_v22  ;;  %v1304_v48 = vor.u32 %v1410_v43, %v1301_v44  ;;  %v1228_v22 = vor.u32 %v1395_v13, %v1227_v12  ;;  %v1184_v43 = vor.u32 %v1380_v38, %v1181_v47 }
 0x1b9   :  { %v591_v7 = vadd.f32 %v590_v28, %v572_v57  ;;  %v1407_v57 = vld [vmem:[#allocation5 + $0xe4] sm:$0xf0] }
 0x1ba   :  { %v592_v61 = vpop.f32.mrf.mxu3  ;;  %992 = vmatpush.bf16.msra.mxu0 %v1324_v25  ;;  %1006 = vmatpush.bf16.msra.mxu1 %v1304_v48  ;;  %v1276_v60 = vor.u32 %v1407_v57, %v1275_v55  ;;  %v1389_v25 = vld [vmem:[#allocation5 + $0x54] sm:$0xf0] }
 0x1bb   :  { %v600_v28 = vmax.f32 %v591_v7, 0.0  ;;  %v1204_v32 = vor.u32 %v1389_v25, %v1203_v24 }
 0x1bc   :  { %v554_v62 = vpop.f32.mrf.mxu1 }
 0x1bd   :  { %v555_v5 = vadd.f32 %v1677_v26, %v554_v62  ;;  %v578_v7 = vpop.f32.mrf.mxu2 }
 0x1be   :  { %993 = vmatpush.bf16.msra.mxu0 %v1300_v46 }
 0x1bf   :  { %v574_v14 = vadd.f32 %v573_v54, %v555_v5  ;;  %v1173_v54 = vld [vmem:[#allocation5 + $0x20] sm:$0xf0] }
 0x1c0   :  { %v1176_v56 = vor.u32 %v1379_v1, %v1173_v54 }
 0x1c1   :  { %v593_v18 = vadd.f32 %v592_v61, %v574_v14  ;;  %v1280_v61 = vor.u32 %v1404_v58, %v1277_v59  ;;  %v1392_v14 = vld [vmem:[#allocation5 + $0x74] sm:$0xf] }
 0x1c2   :  { %v595_v45 = vpop.f32.mrf.mxu3  ;;  %985 = vmatpush.bf16.msrb.mxu3 %v1176_v56  ;;  %994 = vmatpush.bf16.msra.mxu0 %v1276_v60 }
 0x1c3   :  { %v601_v31 = vmax.f32 %v593_v18, 0.0  ;;  %1007 = vmatpush.bf16.msra.mxu1 %v1280_v61  ;;  %v1232_v18 = vor.u32 %v1392_v14, %v1229_v15 }
 0x1c4   :  { %v557_v37 = vpop.f32.mrf.mxu1 }
 0x1c5   :  { %v604_v33 = vadd.f32 %v601_v31, %v600_v28  ;;  %v558_v50 = vadd.f32 %v1677_v26, %v557_v37  ;;  %v621_v31 = vmul.f32 %v1682_v3, %v620_v20  ;;  %v1383_v37 = vld [vmem:[#allocation5 + $0x24] sm:$0xf0] }
 0x1c6   :  { %995 = vmatpush.bf16.msra.mxu0 %v1252_v6 }
 0x1c7   :  { %v605_v49 = vrot.slane %v604_v33, 4  ;;  %v577_v63 = vadd.f32 %v576_v36, %v558_v50  ;;  %1008 = vmatpush.bf16.msra.mxu1 %v1256_v11  ;;  %v1179_v36 = vld [vmem:[#allocation5 + $0x10] sm:$0xf] }
 0x1c8   :  { %v1180_v41 = vor.u32 %v1383_v37, %v1179_v36 }
 0x1c9   :  { %v606_v62 = vadd.f32 %v605_v49, %v604_v33  ;;  %v596_v17 = vadd.f32 %v595_v45, %v577_v63  ;;  %v622_v33 = vadd.f32 %v1682_v3, %v621_v31 }
 0x1ca   :  { %v597_v21 = vpop.f32.mrf.mxu3  ;;  %996 = vmatpush.bf16.msra.mxu0 %v1228_v22 }
 0x1cb   :  { %v607_v16 = vrot.slane %v606_v62, 2  ;;  %v602_v30 = vmax.f32 %v596_v17, 0.0  ;;  %1009 = vmatpush.bf16.msra.mxu1 %v1232_v18  ;;  %v624_v46 = vsel %vm623_vm11, %v1682_v3, %v622_v33  ;;  %v677_v3 = vld [vmem:[%s1705_s6] sm:$0x3f]  ;;  %s1531_s6 = smov [#allocation7]  }
 0x1cc   :  { %v559_v5 = vpop.f32.mrf.mxu1  ;;  %v680_v59 = vperm.slane %v677_v3, 1  ;;  %v682_v63 = vperm.slane %v677_v3, 3  ;;  %v679_v0 = vperm.slane %v677_v3, 0  ;;  %v684_v15 = vperm.slane %v677_v3, 5  ;;  %s1042_s29 = sshll.u32 %s1531_s6, 4  ;;  %s1043_s29 = int_to_ptr.vmem [resolvable:$true] %s1042_s29 }
 0x1cd   :  { %v560_v10 = vadd.f32 %v1677_v26, %v559_v5  ;;  %v1386_v26 = vld [vmem:[#allocation5 + $0x44] sm:$0xf]  ;;  %v608_v29 = vadd.f32 %v607_v16, %v606_v62  ;;  %v681_v62 = vperm.slane %v677_v3, 2  ;;  %v683_v20 = vperm.slane %v677_v3, 4 }
 0x1ce   :  { %v1208_v35 = vor.u32 %v1386_v26, %v1205_v27  ;;  %997 = vmatpush.bf16.msra.mxu0 %v1204_v32 }
 0x1cf   :  { %v579_v19 = vadd.f32 %v578_v7, %v560_v10  ;;  %v609_v39 = vrot.slane %v608_v29, 1 }
 0x1d0   :  { %1010 = vmatpush.bf16.msra.mxu1 %v1208_v35 }
 0x1d1   :  { %v598_v23 = vadd.f32 %v597_v21, %v579_v19  ;;  %v610_v44 = vadd.f32 %v609_v39, %v608_v29 }
 0x1d2   :  { %998 = vmatpush.bf16.msra.mxu0 %v1180_v41 }
 0x1d3   :  { %v603_v28 = vmax.f32 %v598_v23, 0.0  ;;  %v625_v49 = vmul.f32 %v624_v46, %v610_v44 }
 0x1d4   :  { %1011 = vmatpush.bf16.msra.mxu1 %v1184_v43 }
 0x1d5   :  { %v611_v34 = vadd.f32 %v603_v28, %v602_v30  ;;  %v627_v52 = vpack.c.bf16 %v625_v49, %v625_v49 }
 0x1d7   :  { %v612_v40 = vrot.slane %v611_v34, 4  ;;  %v693_v54 = vunpack.c.l.b16 %v627_v52 }
 0x1d9   :  { %v613_v42 = vadd.f32 %v612_v40, %v611_v34 }
 0x1db   :  { %v614_v45 = vrot.slane %v613_v42, 2 }
 0x1dd   :  { %v615_v48 = vadd.f32 %v614_v45, %v613_v42 }
 0x1df   :  { %v616_v50 = vrot.slane %v615_v48, 1 }
 0x1e1   :  { %v617_v51 = vadd.f32 %v616_v50, %v615_v48 }
 0x1e3   :  { %v626_v53 = vmul.f32 %v624_v46, %v617_v51 }
 0x1e5   :  { %v628_v1 = vpack.c.bf16 %v626_v53, %v626_v53 }
 0x1e7   :  { %v694_v55 = vunpack.c.l.b16 %v628_v1 }
 0x1e9   :  { %v696_v56 = vsel %vm695_vm12, %v694_v55, %v693_v54 }
 0x1ea   :  { %v697_v57 = vpack.c.b16 %v696_v56, %v696_v56 }
 0x1ec   :  { %947 = vmatmul.bf16.vlgmr.msrb.gmra.mxu0 %v697_v57  ;;  %960 = vmatmul.bf16.vlgmr.msrb.gmra.mxu1 %v697_v57 }
 0x1ed   :  { %973 = vmatmul.bf16.vlgmr.msrb.gmra.mxu2 %v697_v57  ;;  %986 = vmatmul.bf16.vlgmr.msrb.gmra.mxu3 %v697_v57 }
 0x1fc   :  { %999 = vmatmul.bf16.vlgmr.msra.gmra.mxu0 %v697_v57  ;;  %1012 = vmatmul.bf16.vlgmr.msra.gmra.mxu1 %v697_v57 }
 0x269   :  { %v948_v58 = vpop.f32.mrf.mxu0  ;;  %v961_v60 = vpop.f32.mrf.mxu1 }
 0x26a   :  { %v962_v61 = vadd.f32 %v961_v60, %v680_v59  ;;  %v949_v11 = vadd.f32 %v948_v58, %v679_v0 }
 0x26c   :  { %v1023_v5 = vrot.slane %v962_v61, 6 }
 0x26e   :  { %v1028_v7 = vsel %vm1027_vm13, %v949_v11, %v1023_v5 }
 0x270   :  { %v974_v2 = vpop.f32.mrf.mxu2  ;;  %v987_v4 = vpop.f32.mrf.mxu3 }
 0x271   :  { %v975_v6 = vadd.f32 %v974_v2, %v681_v62  ;;  %v988_v8 = vadd.f32 %v987_v4, %v682_v63  ;;  %v950_v9 = vpop.f32.mrf.mxu0  ;;  %v963_v10 = vpop.f32.mrf.mxu1 }
 0x273   :  { %v1024_v12 = vrot.slane %v975_v6, 4  ;;  %v1025_v13 = vrot.slane %v988_v8, 2 }
 0x275   :  { %v1030_v14 = vsel %vm1029_vm14, %v1024_v12, %v1025_v13 }
 0x276   :  { %v1031_v16 = vsel %vm245_vm5, %v1028_v7, %v1030_v14 }
 0x277   :  { %1035 = vst [vmem:[#allocation7] sm:$0xff] %v1031_v16 }
 0x278   :  { %v976_v17 = vpop.f32.mrf.mxu2  ;;  %v989_v19 = vpop.f32.mrf.mxu3 }
 0x279   :  { %v1000_v21 = vpop.f32.mrf.mxu0  ;;  %v1013_v22 = vpop.f32.mrf.mxu1 }
 0x27a   :  { %v1014_v23 = vadd.f32 %v1013_v22, %v684_v15  ;;  %v1001_v18 = vadd.f32 %v1000_v21, %v683_v20 }
 0x27c   :  { %v1026_v24 = vrot.slane %v1014_v23, 6 }
 0x27e   :  { %v1032_v25 = vsel %vm1027_vm13, %v1001_v18, %v1026_v24 }
 0x27f   :  { %1036 = vst [vmem:[#allocation7 + $0x8] sm:$0xf] %v1032_v25 }
 0x280   :  { %1047 = dma.vmem_to_hbm [thread:$0]  %s1043_s29, 192, %s1045_s9, [#allocation4]  }
 0x281   :  { %v1002_v26 = vpop.f32.mrf.mxu0  ;;  %v1015_v27 = vpop.f32.mrf.mxu1 }
 0x282   :  { %1518 = dma.done.wait [#allocation4], 192  }
 0x283   :  { %1519 = vsyncadd [#allocation4], 4294967104 }
 0x284   :  { %1052 = vsyncpa [#allocation3], 1 }
 0x285   :  { %1053 = vsyncpa [#allocation6], 1 }
 0x286   :  { %1054 = vsyncpa [#allocation4], 1 }

</bundles_post_ra>
